<compile_context>
chip_gen: v6e
topology: v6e:2x2x1
jax: 0.10.0
libtpu: 0.0.40
codegen_flags: <defaults>
</compile_context>

<pallas_src>
import functools
import math

import jax
import jax.numpy as jnp
from jax import lax
from jax.experimental import pallas as pl
from jax.experimental.pallas import tpu as pltpu

LN_EPS = 1e-5  # PyTorch nn.LayerNorm default


def _layernorm(v, g, b):
    mu = jnp.mean(v, axis=-1, keepdims=True)
    var = jnp.mean((v - mu) ** 2, axis=-1, keepdims=True)
    return (v - mu) * lax.rsqrt(var + LN_EPS) * g + b


def _vmem_limit_bytes():
    # v5e/v6e have 128 MiB physical VMEM (raise above the scoped default);
    # v7x has only 64 MiB per TensorCore (cap lower).
    try:
        kind = jax.devices()[0].device_kind.lower()
    except Exception:  # pragma: no cover
        kind = ""
    if "v7" in kind or "7x" in kind:
        return 48 * 1024 * 1024
    return 64 * 1024 * 1024


def _pick_tile(total, target, multiple):
    """Largest divisor of `total` that is <= target and a multiple of
    `multiple`; falls back to `total` (full extent) if none exists."""
    if total <= target:
        return total
    for d in range(target, 0, -1):
        if total % d == 0 and d % multiple == 0:
            return d
    return total


# ----------------------------------------------------------------------------
# Kernel A: depthwise temporal Conv1d (k=3, pad=1, groups=C) + temporal pos-emb
#           + per-batch regrouping (folds the host-side permute into the DMA).
# ----------------------------------------------------------------------------
def _tconv_pemb_kernel(x_ref, w_ref, b_ref, pe_ref, o_ref):
    # x_ref: (Lt, T, C) bf16 for one (layer, batch, L-tile);  o_ref same shape bf16
    lt, t, c = x_ref.shape
    x = x_ref[...].astype(jnp.float32)            # conv math in f32
    w = w_ref[...]                                # (3, C): w[k, c] = conv_w[c, 0, k]
    b = b_ref[...]                                # (1, C)
    pe = pe_ref[...]                              # (T, C)

    # Work on the merged (Lt*T, C) view; the boundary masks below zero the
    # rows that would otherwise wrap across L-slices / the array edge, so the
    # wrap-around of the sublane roll is harmless.
    n_rows = lt * t
    x2 = x.reshape(n_rows, c)
    xl = pltpu.roll(x2, shift=1, axis=0)           # xl[i] = x2[i-1]  (x[t-1])
    xr = pltpu.roll(x2, shift=n_rows - 1, axis=0)  # xr[i] = x2[i+1]  (x[t+1])
    tpos = lax.broadcasted_iota(jnp.int32, (n_rows, 1), 0) % t
    xl = jnp.where(tpos > 0, xl, 0.0)              # zero left-pad at t == 0
    xr = jnp.where(tpos < t - 1, xr, 0.0)          # zero right-pad at t == T-1

    conv = w[1:2, :] * x2 + w[0:1, :] * xl + w[2:3, :] * xr
    out = conv.reshape(lt, t, c) + b + pe          # conv bias then + pemb_t[i]
    o_ref[...] = out.astype(o_ref.dtype)


def tconv_pemb(feats_stack, w, b, pemb):
    n_layers, L, N, T, C = feats_stack.shape
    lt = _pick_tile(L, 16, 1)
    return pl.pallas_call(
        _tconv_pemb_kernel,
        out_shape=jax.ShapeDtypeStruct((n_layers, N, L, T, C), jnp.bfloat16),
        grid_spec=pltpu.PrefetchScalarGridSpec(
            num_scalar_prefetch=0,
            grid=(n_layers, N, L // lt),
            in_specs=[
                pl.BlockSpec((None, lt, None, T, C), lambda i, n, l: (i, l, n, 0, 0)),
                pl.BlockSpec((None, 3, C), lambda i, n, l: (i, 0, 0)),
                pl.BlockSpec((None, 1, C), lambda i, n, l: (i, 0, 0)),
                pl.BlockSpec((None, T, C), lambda i, n, l: (i, 0, 0)),
            ],
            out_specs=pl.BlockSpec((None, None, lt, T, C),
                                   lambda i, n, l: (i, n, l, 0, 0)),
        ),
        compiler_params=pltpu.CompilerParams(
            dimension_semantics=("parallel", "parallel", "parallel"),
            vmem_limit_bytes=_vmem_limit_bytes(),
        ),
    )(feats_stack, w, b, pemb)


# ----------------------------------------------------------------------------
# Kernel B: fused stack of ResidualDecoderBlocks + projection head.
#   grid = (batch_tiles, n_layers); x carried in VMEM scratch; weights streamed
#   per layer; KV-side LayerNorm / projection / attention chunked over kv_len.
# ----------------------------------------------------------------------------
# Packed per-layer vector rows (vecs_ref):
#   0 ln1_g  1 ln1_b  2 ln3_g  3 ln3_b  4 ln2_g  5 ln2_b
#   6 bq(pre-scaled)  7 bo  8 bpj  9 bk  10 bv
def _decoder_stack_kernel(x0_ref, feats_ref, mask_ref, vecs_ref, bfc_ref,
                          wq_ref, wkv_ref, wo_ref, wfc_ref, wpj_ref,
                          pln_g_ref, pln_b_ref, pw_ref, pb_ref,
                          o_ref, x_scr, *, n_head, kv_chunk):
    layer = pl.program_id(1)

    @pl.when(layer == 0)
    def _():
        x_scr[...] = x0_ref[...]

    bn, c = x_scr.shape
    kv_len = feats_ref.shape[1]
    f32 = jnp.float32
    bf16 = jnp.bfloat16

    vecs = vecs_ref[...]                                          # (11, C) f32
    ln1_g, ln1_b = vecs[0:1], vecs[1:2]
    ln3_g, ln3_b = vecs[2:3], vecs[3:4]
    ln2_g, ln2_b = vecs[4:5], vecs[5:6]
    bq, bo, bpj = vecs[6:7], vecs[7:8], vecs[8:9]
    bk, bv = vecs[9:10], vecs[10:11]

    x = x_scr[...]                                                # (bn, C) f32

    # ---------------- cross attention (Tx == 1 query per batch) -------------
    xh = _layernorm(x, ln1_g, ln1_b)                              # ln_1(x)
    # 1/sqrt(dh) is folded into wq/bq at init.
    q = jnp.dot(xh.astype(bf16), wq_ref[...], preferred_element_type=f32) + bq
    mask = mask_ref[...]                                          # (H, C) 0/1 f32
    qm = (q[:, None, :] * mask[None, :, :]).astype(bf16)          # (bn, H, C)

    wkv = wkv_ref[...]                                            # (C, 2C) bf16
    n_chunks = kv_len // kv_chunk

    def attend_chunk(start, carry):
        m_i, l_i, acc = carry
        y = feats_ref[:, pl.ds(start, kv_chunk), :].astype(f32)   # (bn, kc, C)
        yh = _layernorm(y, ln3_g, ln3_b)                          # ln_3(y) chunk
        kv = jnp.dot(yh.reshape(bn * kv_chunk, c).astype(bf16), wkv,
                     preferred_element_type=f32)                  # (bn*kc, 2C)
        k = (kv[:, :c] + bk).reshape(bn, kv_chunk, c).astype(bf16)
        v = (kv[:, c:] + bv).reshape(bn, kv_chunk, c).astype(bf16)
        # head one-hot mask on the query -> lane-dense (bn, H, kc) scores with
        # one batched MXU einsum (no per-batch / per-head loops).
        s = jnp.einsum('nhc,nkc->nhk', qm, k, preferred_element_type=f32)
        m_new = jnp.maximum(m_i, jnp.max(s, axis=-1, keepdims=True))
        alpha = jnp.exp(m_i - m_new)
        p = jnp.exp(s - m_new)
        l_new = alpha * l_i + jnp.sum(p, axis=-1, keepdims=True)
        acc_new = alpha * acc + jnp.einsum('nhk,nkc->nhc', p.astype(bf16), v,
                                           preferred_element_type=f32)
        return m_new, l_new, acc_new

    init = (jnp.full((bn, n_head, 1), -jnp.inf, f32),
            jnp.zeros((bn, n_head, 1), f32),
            jnp.zeros((bn, n_head, c), f32))
    if n_chunks == 1:
        m_i, l_i, acc = attend_chunk(0, init)
    else:
        def body(ci, carry):
            return attend_chunk(pl.multiple_of(ci * kv_chunk, kv_chunk), carry)
        m_i, l_i, acc = lax.fori_loop(0, n_chunks, body, init)

    oh = acc * pl.reciprocal(l_i, approx=True)                    # (bn, H, C)
    attn = jnp.sum(oh * mask[None, :, :], axis=1)                 # (bn, C)
    attn = jnp.dot(attn.astype(bf16), wo_ref[...], preferred_element_type=f32) + bo

    x1 = x + attn                                                 # residual 1

    # ------------------------------- MLP ------------------------------------
    xh2 = _layernorm(x1, ln2_g, ln2_b)
    h1 = (jnp.dot(xh2.astype(bf16), wfc_ref[...], preferred_element_type=f32)
          + bfc_ref[...])
    h1 = h1 * jax.nn.sigmoid(1.702 * h1)                          # QuickGELU (f32)
    mlp = jnp.dot(h1.astype(bf16), wpj_ref[...], preferred_element_type=f32) + bpj

    x2 = x1 + mlp                                                 # residual 2
    x_scr[...] = x2

    # ----------------- fused projection head (last layer only) --------------
    @pl.when(layer == pl.num_programs(1) - 1)
    def _():
        xp = _layernorm(x2, pln_g_ref[...], pln_b_ref[...])
        o_ref[...] = (jnp.dot(xp.astype(bf16), pw_ref[...],
                              preferred_element_type=f32) + pb_ref[...])


def decoder_stack(x0, feats, head_mask, p, *, n_head):
    n_layers, n, kv_len, c = feats.shape
    d_mlp = p["wfc_t"].shape[-1]
    n_cls_pad = p["proj_w_t"].shape[-1]

    bn = _pick_tile(n, 8, 8)             # batch tile (bounds VMEM, megacore)
    kv_chunk = _pick_tile(kv_len, 512, 8)  # kv chunk for LN + KV proj + attn
    nb = n // bn

    def fixed(shape):
        nd = len(shape)
        return pl.BlockSpec(shape, lambda b, i, _nd=nd: (0,) * _nd)

    def per_layer(shape):
        nd = len(shape)
        return pl.BlockSpec((None,) + shape, lambda b, i, _nd=nd: (i,) + (0,) * _nd)

    in_specs = [
        pl.BlockSpec((bn, c), lambda b, i: (b, 0)),                     # x0
        pl.BlockSpec((None, bn, kv_len, c), lambda b, i: (i, b, 0, 0)),  # feats
        fixed((n_head, c)),                                              # head mask
        per_layer((11, c)),                                              # packed vecs
        per_layer((1, d_mlp)),                                           # bfc
        per_layer((c, c)),                                               # wq (scaled)
        per_layer((c, 2 * c)),                                           # wkv (fused)
        per_layer((c, c)),                                               # wo
        per_layer((c, d_mlp)),                                           # wfc
        per_layer((d_mlp, c)),                                           # wpj
        fixed((1, c)), fixed((1, c)),                                    # proj LN g/b
        fixed((c, n_cls_pad)), fixed((1, n_cls_pad)),                    # proj w, b
    ]
    args = (x0, feats, head_mask, p["vecs"], p["bfc"],
            p["wq_t"], p["wkv_t"], p["wo_t"], p["wfc_t"], p["wpj_t"],
            p["proj_ln_g"], p["proj_ln_b"], p["proj_w_t"], p["proj_b"])

    kernel = functools.partial(_decoder_stack_kernel, n_head=n_head,
                               kv_chunk=kv_chunk)
    return pl.pallas_call(
        kernel,
        out_shape=jax.ShapeDtypeStruct((n, n_cls_pad), jnp.float32),
        grid_spec=pltpu.PrefetchScalarGridSpec(
            num_scalar_prefetch=0,
            grid=(nb, n_layers),
            in_specs=in_specs,
            out_specs=pl.BlockSpec((bn, n_cls_pad), lambda b, i: (b, 0)),
            scratch_shapes=[pltpu.VMEM((bn, c), jnp.float32)],
        ),
        compiler_params=pltpu.CompilerParams(
            dimension_semantics=("parallel", "arbitrary"),
            vmem_limit_bytes=_vmem_limit_bytes(),
        ),
    )(*args)


# ----------------------------------------------------------------------------
# Parameter construction (deterministic, synthetic; shapes follow __init__)
# ----------------------------------------------------------------------------
def init_params(key, *, n_layers, n_dim, n_head, mlp_factor, t_size, num_classes):
    d_mlp = int(round(mlp_factor * n_dim))
    dh = n_dim // n_head
    scale = 1.0 / math.sqrt(dh)
    n_cls_pad = ((num_classes + 127) // 128) * 128

    def xavier(k, fan_out, fan_in):
        a = math.sqrt(6.0 / (fan_in + fan_out))
        return jax.random.uniform(k, (fan_out, fan_in), jnp.float32, -a, a)

    keys = iter(jax.random.split(key, 10 + 8 * n_layers))
    nk = lambda: next(keys)
    zeros = lambda *s: jnp.zeros(s, jnp.float32)
    ones = lambda *s: jnp.ones(s, jnp.float32)

    wq, wkv, wo, wfc, wpj, bfc, bpj = [], [], [], [], [], [], []
    for _ in range(n_layers):
        in_proj = xavier(nk(), 3 * n_dim, n_dim)            # MHA in_proj_weight
        wq.append(in_proj[:n_dim].T * scale)                # fold 1/sqrt(dh)
        wkv.append(jnp.concatenate([in_proj[n_dim:2 * n_dim].T,
                                    in_proj[2 * n_dim:].T], axis=-1))  # (C, 2C)
        wo.append(xavier(nk(), n_dim, n_dim).T)
        wfc.append(xavier(nk(), d_mlp, n_dim).T)            # (C, Dm)
        wpj.append(xavier(nk(), n_dim, d_mlp).T)            # (Dm, C)
        bfc.append(0.02 * jax.random.normal(nk(), (d_mlp,), jnp.float32))
        bpj.append(0.02 * jax.random.normal(nk(), (n_dim,), jnp.float32))

    # Packed per-layer C-sized vectors (see _decoder_stack_kernel for row map).
    vecs = jnp.stack([
        ones(n_layers, n_dim), zeros(n_layers, n_dim),      # ln1 g, b
        ones(n_layers, n_dim), zeros(n_layers, n_dim),      # ln3 g, b
        ones(n_layers, n_dim), zeros(n_layers, n_dim),      # ln2 g, b
        zeros(n_layers, n_dim),                             # bq (pre-scaled; zero)
        zeros(n_layers, n_dim),                             # bo
        jnp.stack(bpj),                                      # bpj
        zeros(n_layers, n_dim),                             # bk
        zeros(n_layers, n_dim),                             # bv
    ], axis=1)                                               # (n_layers, 11, C)

    proj_w = xavier(nk(), num_classes, n_dim)                # torch Linear (K, C)
    proj_w_t = jnp.zeros((n_dim, n_cls_pad), jnp.float32).at[:, :num_classes].set(proj_w.T)

    params = {
        # Module init sets cls/pemb to zeros and tconv to identity [0,1,0] with
        # zero bias; randomized here (synthetic weights) so the kernels are
        # exercised with non-degenerate data.
        "cls_token": 0.02 * jax.random.normal(nk(), (n_dim,), jnp.float32),
        "pemb_t": 0.02 * jax.random.normal(nk(), (n_layers, t_size, n_dim), jnp.float32),
        "tconv_w": 0.5 * jax.random.normal(nk(), (n_layers, 3, n_dim), jnp.float32),
        "tconv_b": 0.02 * jax.random.normal(nk(), (n_layers, 1, n_dim), jnp.float32),

        "vecs": vecs,
        "bfc": jnp.stack(bfc)[:, None, :],                   # (n_layers, 1, Dm)
        "wq_t": jnp.stack(wq).astype(jnp.bfloat16),
        "wkv_t": jnp.stack(wkv).astype(jnp.bfloat16),
        "wo_t": jnp.stack(wo).astype(jnp.bfloat16),
        "wfc_t": jnp.stack(wfc).astype(jnp.bfloat16),
        "wpj_t": jnp.stack(wpj).astype(jnp.bfloat16),

        "proj_ln_g": ones(1, n_dim), "proj_ln_b": zeros(1, n_dim),
        "proj_w_t": proj_w_t.astype(jnp.bfloat16),           # (C, padded classes)
        "proj_b": zeros(1, n_cls_pad),
        "num_classes": num_classes,
    }
    return params


# ----------------------------------------------------------------------------
# TransformerDecoder.forward
# ----------------------------------------------------------------------------
def transformer_decoder_forward(clip_feats_all, params, *, n_head):
    # Accept a list of per-layer (L, N, T, C) features or a pre-stacked
    # (n_layers, L, N, T, C) tensor; features are streamed to Kernel A as bf16.
    if isinstance(clip_feats_all, (list, tuple)):
        feats_in = jnp.stack(clip_feats_all, axis=0)
    else:
        feats_in = clip_feats_all
    feats_in = feats_in.astype(jnp.bfloat16)
    n_layers, L, N, T, C = feats_in.shape

    # Kernel A: tconv + pemb; output already per-batch grouped (permute folded
    # into the output index_map).  Merge (L, T) -> Tkv with a free reshape.
    feats = tconv_pemb(feats_in, params["tconv_w"], params["tconv_b"], params["pemb_t"])
    feats = feats.reshape(n_layers, N, L * T, C)

    # x = temporal_cls_token.view(1,1,-1).repeat(1,N,1); Tx == 1 carried as (N, C)
    x0 = jnp.broadcast_to(params["cls_token"][None, :], (N, C)).astype(jnp.float32)

    dh = C // n_head
    head_mask = (jnp.arange(C, dtype=jnp.int32)[None, :] // dh
                 == jnp.arange(n_head, dtype=jnp.int32)[:, None]).astype(jnp.float32)

    # Kernel B: all decoder layers + final LayerNorm/projection fused into one
    # pallas_call; add_residual=False path -> proj(x[0, :, :]).
    logits = decoder_stack(x0, feats, head_mask, params, n_head=n_head)
    return logits[:, : params["num_classes"]]


if __name__ == "__main__":
    n_layers, n_dim, n_head = 2, 128, 4
    mlp_factor, t_size, num_classes = 4.0, 8, 32
    L, N = 4, 2

    key = jax.random.PRNGKey(0)
    kp, kf = jax.random.split(key)
    params = init_params(kp, n_layers=n_layers, n_dim=n_dim, n_head=n_head,
                         mlp_factor=mlp_factor, t_size=t_size,
                         num_classes=num_classes)
    fkeys = jax.random.split(kf, n_layers)
    clip_feats_all = [
        jax.random.normal(fkeys[i], (L, N, t_size, n_dim), jnp.float32).astype(jnp.bfloat16)
        for i in range(n_layers)
    ]

    out = transformer_decoder_forward(clip_feats_all, params, n_head=n_head)
    out = jax.block_until_ready(out)
    assert out.shape == (N, num_classes)
    assert bool(jnp.all(jnp.isfinite(out)))
    print("KERNEL_OK")
</pallas_src>

<mosaic_0001>
module attributes {stable_mosaic.version = 11 : i64} {
  func.func @_tconv_pemb_kernel(%arg0: i32, %arg1: i32, %arg2: i32, %arg3: memref<1x4x1x8x128xbf16, #tpu.memory_space<vmem>>, %arg4: memref<1x3x128xf32, #tpu.memory_space<vmem>>, %arg5: memref<1x1x128xf32, #tpu.memory_space<vmem>>, %arg6: memref<1x8x128xf32, #tpu.memory_space<vmem>>, %arg7: memref<1x1x4x8x128xbf16, #tpu.memory_space<vmem>>) attributes {dimension_semantics = [#tpu.dimension_semantics<parallel>, #tpu.dimension_semantics<parallel>, #tpu.dimension_semantics<parallel>], iteration_bounds = array<i64: 2, 2, 1>, scalar_prefetch = 0 : i64, scratch_operands = 0 : i64, tpu.core_type = #tpu.core_type<tc>, window_params = [{transform_indices = @transform_0, window_bounds = array<i64: 1, 4, 1, 8, 128>}, {transform_indices = @transform_1, window_bounds = array<i64: 1, 3, 128>}, {transform_indices = @transform_2, window_bounds = array<i64: 1, 1, 128>}, {transform_indices = @transform_3, window_bounds = array<i64: 1, 8, 128>}, {transform_indices = @transform_4, window_bounds = array<i64: 1, 1, 4, 8, 128>}]} {
    %c0 = arith.constant 0 : index
    %c0_0 = arith.constant 0 : index
    %c0_1 = arith.constant 0 : index
    %c0_2 = arith.constant 0 : index
    %c0_3 = arith.constant 0 : index
    %0 = vector.load %arg3[%c0, %c0_0, %c0_1, %c0_2, %c0_3] : memref<1x4x1x8x128xbf16, #tpu.memory_space<vmem>>, vector<1x4x1x8x128xbf16>
    %1 = vector.shape_cast %0 : vector<1x4x1x8x128xbf16> to vector<4x8x128xbf16>
    %2 = arith.extf %1 : vector<4x8x128xbf16> to vector<4x8x128xf32>
    %c0_4 = arith.constant 0 : index
    %c0_5 = arith.constant 0 : index
    %c0_6 = arith.constant 0 : index
    %3 = vector.load %arg4[%c0_4, %c0_5, %c0_6] : memref<1x3x128xf32, #tpu.memory_space<vmem>>, vector<1x3x128xf32>
    %4 = vector.shape_cast %3 : vector<1x3x128xf32> to vector<3x128xf32>
    %c0_7 = arith.constant 0 : index
    %c0_8 = arith.constant 0 : index
    %c0_9 = arith.constant 0 : index
    %5 = vector.load %arg5[%c0_7, %c0_8, %c0_9] : memref<1x1x128xf32, #tpu.memory_space<vmem>>, vector<1x1x128xf32>
    %6 = vector.shape_cast %5 : vector<1x1x128xf32> to vector<1x128xf32>
    %c0_10 = arith.constant 0 : index
    %c0_11 = arith.constant 0 : index
    %c0_12 = arith.constant 0 : index
    %7 = vector.load %arg6[%c0_10, %c0_11, %c0_12] : memref<1x8x128xf32, #tpu.memory_space<vmem>>, vector<1x8x128xf32>
    %8 = vector.shape_cast %7 : vector<1x8x128xf32> to vector<8x128xf32>
    %9 = vector.shape_cast %2 : vector<4x8x128xf32> to vector<32x128xf32>
    %c1_i32 = arith.constant 1 : i32
    %10 = tpu.dynamic_rotate %9 by %c1_i32 dim 0 : vector<32x128xf32>, i32 -> vector<32x128xf32>
    %c31_i32 = arith.constant 31 : i32
    %11 = tpu.dynamic_rotate %9 by %c31_i32 dim 0 : vector<32x128xf32>, i32 -> vector<32x128xf32>
    %12 = tpu.iota {dimensions = array<i32: 0>} : vector<32x1xi32>
    %c8_i32 = arith.constant 8 : i32
    %c0_i32 = arith.constant 0 : i32
    %13 = arith.cmpi eq, %c8_i32, %c0_i32 : i32
    %c1_i32_13 = arith.constant 1 : i32
    %14 = arith.select %13, %c1_i32_13, %c8_i32 : i32
    %15 = vector.broadcast %14 : i32 to vector<32x1xi32>
    %16 = arith.remsi %12, %15 : vector<32x1xi32>
    %c0_i32_14 = arith.constant 0 : i32
    %17 = vector.broadcast %c0_i32_14 : i32 to vector<32x1xi32>
    %18 = arith.cmpi ne, %16, %17 : vector<32x1xi32>
    %c0_i32_15 = arith.constant 0 : i32
    %19 = vector.broadcast %c0_i32_15 : i32 to vector<32x1xi32>
    %20 = arith.cmpi slt, %16, %19 : vector<32x1xi32>
    %c0_i32_16 = arith.constant 0 : i32
    %21 = arith.cmpi slt, %14, %c0_i32_16 : i32
    %22 = vector.broadcast %21 : i1 to vector<32x1xi1>
    %23 = vector.broadcast %22 : vector<32x1xi1> to vector<32x1xi1>
    %24 = arith.xori %20, %23 : vector<32x1xi1>
    %25 = arith.andi %24, %18 : vector<32x1xi1>
    %26 = vector.broadcast %14 : i32 to vector<32x1xi32>
    %27 = arith.addi %16, %26 : vector<32x1xi32>
    %28 = arith.select %25, %27, %16 : vector<32x1xi1>, vector<32x1xi32>
    %c0_i32_17 = arith.constant 0 : i32
    %29 = vector.broadcast %c0_i32_17 : i32 to vector<32x1xi32>
    %30 = arith.cmpi sgt, %28, %29 : vector<32x1xi32>
    %cst = arith.constant 0.000000e+00 : f32
    %31 = vector.shape_cast %30 : vector<32x1xi1> to vector<32x1xi1>
    %32 = vector.broadcast %31 : vector<32x1xi1> to vector<32x128xi1>
    %33 = vector.broadcast %cst : f32 to vector<32x128xf32>
    %34 = arith.select %32, %10, %33 : vector<32x128xi1>, vector<32x128xf32>
    %c7_i32 = arith.constant 7 : i32
    %35 = vector.broadcast %c7_i32 : i32 to vector<32x1xi32>
    %36 = arith.cmpi slt, %28, %35 : vector<32x1xi32>
    %cst_18 = arith.constant 0.000000e+00 : f32
    %37 = vector.shape_cast %36 : vector<32x1xi1> to vector<32x1xi1>
    %38 = vector.broadcast %37 : vector<32x1xi1> to vector<32x128xi1>
    %39 = vector.broadcast %cst_18 : f32 to vector<32x128xf32>
    %40 = arith.select %38, %11, %39 : vector<32x128xi1>, vector<32x128xf32>
    %41 = vector.extract_strided_slice %4 {offsets = [1, 0], sizes = [1, 128], strides = [1, 1]} : vector<3x128xf32> to vector<1x128xf32>
    %42 = vector.broadcast %41 : vector<1x128xf32> to vector<32x128xf32>
    %43 = arith.mulf %42, %9 : vector<32x128xf32>
    %44 = vector.extract_strided_slice %4 {offsets = [0, 0], sizes = [1, 128], strides = [1, 1]} : vector<3x128xf32> to vector<1x128xf32>
    %45 = vector.broadcast %44 : vector<1x128xf32> to vector<32x128xf32>
    %46 = arith.mulf %45, %34 : vector<32x128xf32>
    %47 = arith.addf %43, %46 : vector<32x128xf32>
    %48 = vector.extract_strided_slice %4 {offsets = [2, 0], sizes = [1, 128], strides = [1, 1]} : vector<3x128xf32> to vector<1x128xf32>
    %49 = vector.broadcast %48 : vector<1x128xf32> to vector<32x128xf32>
    %50 = arith.mulf %49, %40 : vector<32x128xf32>
    %51 = arith.addf %47, %50 : vector<32x128xf32>
    %52 = vector.shape_cast %51 : vector<32x128xf32> to vector<4x8x128xf32>
    %53 = vector.shape_cast %6 : vector<1x128xf32> to vector<1x1x128xf32>
    %54 = vector.broadcast %53 : vector<1x1x128xf32> to vector<4x8x128xf32>
    %55 = arith.addf %52, %54 : vector<4x8x128xf32>
    %56 = vector.shape_cast %8 : vector<8x128xf32> to vector<1x8x128xf32>
    %57 = vector.broadcast %56 : vector<1x8x128xf32> to vector<4x8x128xf32>
    %58 = arith.addf %55, %57 : vector<4x8x128xf32>
    %59 = arith.truncf %58 : vector<4x8x128xf32> to vector<4x8x128xbf16>
    %c0_19 = arith.constant 0 : index
    %c0_20 = arith.constant 0 : index
    %c0_21 = arith.constant 0 : index
    %c0_22 = arith.constant 0 : index
    %c0_23 = arith.constant 0 : index
    %60 = vector.load %arg7[%c0_19, %c0_20, %c0_21, %c0_22, %c0_23] : memref<1x1x4x8x128xbf16, #tpu.memory_space<vmem>>, vector<1x1x4x8x128xbf16>
    %61 = vector.shape_cast %60 : vector<1x1x4x8x128xbf16> to vector<4x8x128xbf16>
    %62 = vector.shape_cast %59 : vector<4x8x128xbf16> to vector<1x1x4x8x128xbf16>
    tpu.vector_store %arg7[%c0_19, %c0_20, %c0_21, %c0_22, %c0_23], %62 {strides = array<i32>} : memref<1x1x4x8x128xbf16, #tpu.memory_space<vmem>>, vector<1x1x4x8x128xbf16>,
    return
  }
  func.func @transform_0(%arg0: i32, %arg1: i32, %arg2: i32) -> (i32, i32, i32, i32, i32) {
    %c0_i32 = arith.constant 0 : i32
    %c0_i32_0 = arith.constant 0 : i32
    %c0_i32_1 = arith.constant 0 : i32
    return %arg0, %arg2, %arg1, %c0_i32, %c0_i32_0 : i32, i32, i32, i32, i32
  }
  func.func @transform_1(%arg0: i32, %arg1: i32, %arg2: i32) -> (i32, i32, i32) {
    %c0_i32 = arith.constant 0 : i32
    %c0_i32_0 = arith.constant 0 : i32
    %c0_i32_1 = arith.constant 0 : i32
    return %arg0, %c0_i32, %c0_i32_0 : i32, i32, i32
  }
  func.func @transform_2(%arg0: i32, %arg1: i32, %arg2: i32) -> (i32, i32, i32) {
    %c0_i32 = arith.constant 0 : i32
    %c0_i32_0 = arith.constant 0 : i32
    %c0_i32_1 = arith.constant 0 : i32
    return %arg0, %c0_i32, %c0_i32_0 : i32, i32, i32
  }
  func.func @transform_3(%arg0: i32, %arg1: i32, %arg2: i32) -> (i32, i32, i32) {
    %c0_i32 = arith.constant 0 : i32
    %c0_i32_0 = arith.constant 0 : i32
    %c0_i32_1 = arith.constant 0 : i32
    return %arg0, %c0_i32, %c0_i32_0 : i32, i32, i32
  }
  func.func @transform_4(%arg0: i32, %arg1: i32, %arg2: i32) -> (i32, i32, i32, i32, i32) {
    %c0_i32 = arith.constant 0 : i32
    %c0_i32_0 = arith.constant 0 : i32
    %c0_i32_1 = arith.constant 0 : i32
    return %arg0, %arg1, %arg2, %c0_i32, %c0_i32_0 : i32, i32, i32, i32, i32
  }
}

</mosaic_0001>

<bundles_post_ra>
// kernel: tpu_custom_call.1
= control target key start
LH: loop header
LB: loop body
LE: loop exit
PB: predicated region body
PF: predicated region fallthrough
CT: control target
= control target key end

     0   :  { %9 = vsyncpa [#allocation3], 0  ;;  %s1141_s0 = inlined_call_operand.hbm [shape: bf16[2,4,2,8,128], index: 0, kind: input, shape index: {}]   ;;  %s1142_s1 = inlined_call_operand.vmem [shape: f32[2,3,128], index: 1, kind: input, shape index: {}]   ;;  %s1143_s2 = inlined_call_operand.vmem [shape: f32[2,1,128], index: 2, kind: input, shape index: {}]   ;;  %s1144_s3 = inlined_call_operand.vmem [shape: f32[2,8,128], index: 3, kind: input, shape index: {}]   ;;  %s1145_s4 = inlined_call_operand.hbm [shape: bf16[2,2,4,8,128], index: 4, kind: output, shape index: {}]  }
   0x1   :  { %11 = vsyncpa [#allocation3 + $0x1], 0 }
   0x2   :  { %12 = vsyncpa [#allocation4], 0 }
   0x3   :  { %14 = vsyncpa [#allocation4 + $0x1], 0  ;;  %s892_s15 = smov 0   ;;  %s894_s16 = smov 0  }
   0x4   :  { %s896_s17 = smov 0   ;;  %s898_s18 = smov 0  }
   0x5   :  { %s900_s19 = smov 0   ;;  %s902_s20 = smov 0  }
   0x6   :  { %s904_s21 = smov 0   ;;  %s906_s22 = smov 0  }
   0x7 LB: > { %1149 = sst [smem:[#allocation8_spill]] %s830_s15  ;;  %s612_s23 = sadd.s32 4294967295, %s858_s22   ;;  %s858_s22 = sphi %s906_s22, %s20_s22   ;;  %s854_s21 = sphi %s904_s21, %s1178_s21   ;;  %s850_s20 = sphi %s902_s20, %s1177_s20   ;;  %s846_s19 = sphi %s900_s19, %s1176_s19   ;;  %s842_s18 = sphi %s898_s18, %s1175_s18   ;;  %s838_s17 = sphi %s896_s17, %s1174_s17   ;;  %s834_s16 = sphi %s894_s16, %s1173_s16   ;;  %s830_s15 = sphi %s892_s15, %s1172_s15  }
   0x8   : > { %s613_s24 = sadd.s32 4294967294, %s858_s22   ;;  %s35_s25 = sadd.s32 1, %s850_s20 }
   0x9   : > { %s39_s26 = sadd.s32 1, %s854_s21  ;;  %p37_p0 = scmp.ge.s32.totalorder %s35_s25, 2 }
   0xa   : > { %s50_s27 = sadd.s32 1, %s838_s17  ;;  %p57_p1 = scmp.ne.s32.totalorder %s838_s17, %s834_s16 }
   0xb   : > { %p58_p2 = scmp.eq.s32.totalorder %s858_s22, 0  ;;  %s1180_s25 = smov (%p37_p0, %s35_s25), 0 }
   0xc   : > { %1150 = sst [smem:[#allocation9_spill]] %s1180_s25  ;;  %s1182_s26 = smov (!%p37_p0, %s39_s26), %s854_s21 }
   0xd   : > { %s46_s28 = ssub.s32 %s850_s20, %s1180_s25  ;;  %p945_p3 = por %p58_p2, %p57_p1 }
   0xe   : > { %p41_p4 = scmp.ge.s32.totalorder %s1182_s26, 2  ;;  %p63_p5 = scmp.ne.s32.totalorder %s834_s16, %s830_s15 }
   0xf   : > { %p64_p6 = scmp.eq.s32.totalorder %s612_s23, 0  ;;  %p169_p7 = scmp.eq.s32.totalorder %s612_s23, 3 }
  0x10   : > { %s1184_s26 = smov (%p41_p4, %s1182_s26), 0  ;;  %p175_p10 = scmp.eq.s32.totalorder %s613_s24, 3 }
  0x11   : > { %1152 = sst [smem:[#allocation10_spill]] %s1184_s26  ;;  %p953_p8 = por %p64_p6, %p63_p5 }
  0x12   : > { %p957_p9 = por %p169_p7, %p57_p1  ;;  %s43_s6 = ssub.s32 %s854_s21, %s1184_s26 }
  0x13   : > { %s47_s7 = sor.u32 %s46_s28, %s43_s6  ;;  %p963_p12 = por %p175_p10, %p63_p5 }
  0x14   : > { %p48_p11 = scmp.eq.s32.totalorder %s47_s7, 0  ;;  %p663_p13 = scmp.lt.s32.totalorder %s858_s22, 4 }
  0x15   : > { %s195_s9 = sand.u32 1, %s838_s17   ;;  %s617_s12 = sshll.u32 %s854_s21, 3 }
  0x16   : > { %s970_s10 = scalar_select %p48_p11, %s838_s17, %s50_s27  }
  0x17   : > { %s616_s11 = sshll.u32 %s195_s9, 4  ;;  %s207_s13 = sadd.s32 %s850_s20, %s617_s12 }
  0x18   : > { %s199_s14 = scalar_lea.vmem [#allocation2], %s616_s11  ;;  %s618_s25 = sshll.u32 %s207_s13, 6 }
  0x19   : > { %s210_s23 = sshll.u32 %s199_s14, 4  ;;  %s209_s24 = scalar_lea.hbm %s1141_s0, %s618_s25  ;;  %s211_s23 = int_to_ptr.vmem [resolvable:$true] %s210_s23 }
  0x1a   : > { %p979_p0 = pnand %p663_p13, %p945_p3  ;;  %s196_s6 = scalar_lea.sflag [#allocation3], %s195_s9 }
  0x1b   : > { %s747_s27 = scalar_lea.vmem %s211_s23, 256  ;;  %s860_s7 = smov [#allocation2]  }
  0x1c   : > { %p736_p1 = pneg %p979_p0  ;;  %p748_p2 = scmp.ne.s32.totalorder %s211_s23, %s747_s27 }
  0x1d   : > { %s752_s11 = sshll.u32 %s860_s7, 4  ;;  %s753_s11 = int_to_ptr.vmem [resolvable:$false] %s752_s11 }
  0x1e   : > { %p750_p4 = pnand %p748_p2, %p736_p1  ;;  %s754_s12 = scalar_lea.vmem %s753_s11, 512 }
  0x1f   : > { %p755_p6 = scmp.lt.s32.totalorder %s211_s23, %s753_s11  ;;  %p756_p7 = scmp.lt.s32.totalorder %s754_s12, %s747_s27 }
  0x20   : > { %p751_p5 = pneg %p750_p4 }
  0x21   : > { %p757_p10 = por %p756_p7, %p755_p6 }
  0x23   : > { %p758_p11 = pnand %p757_p10, %p751_p5 }
  0x25   : > { %761 = shalt.err (!%p758_p11)
}
  0x26   : > { %s861_s15 = smov 128   ;;  %s862_s25 = smov 64  }
  0x27   : > { %s863_s26 = smov 4   ;;  %p619_p3 = scmp.ge.s32.totalorder %s858_s22, 1 }
  0x28   : > { %658 = dma.hbm_to_vmem [thread:$0]  (!%p979_p0), %s209_s24, 256, %s211_s23, %s196_s6, %s861_s15, %s862_s25, %s863_s26  }
  0x29   : > { %p238_p13 = scmp.lt.s32.totalorder %s858_s22, 5 }
  0x2b   : > { %p239_p1 = pnand %p619_p3, %p238_p13 }
  0x2c   : > { %s990_s29 = sand.u32 (!%p239_p1), 1, %s834_s16  }
  0x2d   : > { %242 = sbr.rel (%p239_p1) target bundleno = 95 (0x5f), region = 36  ;;  %s620_s9 = sshll.u32 (!%p239_p1), %s990_s29, 4 }
  0x2e   : > { %s245_s13 = scalar_lea.sflag (!%p239_p1), [#allocation3], %s990_s29  ;;  %s248_s14 = scalar_lea.vmem (!%p239_p1), [#allocation2], %s620_s9 }
  0x32   : > { %821 = dma.done.wait (%p953_p8), %s245_s13, 256  }
  0x33   : > { %823 = vsyncadd (%p953_p8), %s245_s13, 4294967040  ;;  %p285_p0 = scmp.lt.s32.totalorder %s846_s19, 1  ;;  %v312_v0 = vlaneseq  ;;  %v632_v11 = vld [vmem:[%s248_s14] sm:$0xff]   ;;  %v649_v12 = vld [vmem:[%s248_s14 + $0x8] sm:$0xff]   ;;  %s626_s13 = sshll.u32 %s842_s18, 2 }
  0x34   : > { %v633_v16 = vunpack.c.l.bf16 %v632_v11  ;;  %v634_v17 = vunpack.c.h.bf16 %v632_v11  ;;  %v637_v18 = vunpack.c.l.bf16 %v649_v12  ;;  %v638_v19 = vunpack.c.h.bf16 %v649_v12  ;;  %s627_s14 = sshll.u32 %s846_s19, 3  ;;  %s864_s7 = smov [#allocation5]  }
  0x35   : > { %s1002_s23 = scalar_select %p285_p0, %s846_s19, 1  ;;  %v1004_v1 = vshrl.u32 %v312_v0, 7 }
  0x36   : > { %v308_v24 = vrot.slane %v633_v16, 7  ;;  %v309_v25 = vrot.slane %v634_v17, 7  ;;  %v311_v26 = vrot.slane %v638_v19, 7  ;;  %v319_v27 = vrot.slane %v633_v16, 1  ;;  %s766_s11 = sshll.u32 %s864_s7, 4  ;;  %s767_s11 = int_to_ptr.vmem [resolvable:$false] %s766_s11 }
  0x37   : > { %s622_s24 = sshll.u32 %s1002_s23, 2  ;;  %vm314_vm0 = vcmp.lt.s32.totalorder %v1004_v1, 1  ;;  %v328_v2 = vadd.s32 8, %v1004_v1  ;;  %v335_v3 = vand.u32 7, %v1004_v1  ;;  %vm323_vm1 = vcmp.lt.s32.totalorder %v1004_v1, 7  ;;  %s623_s27 = sshll.u32 %s1002_s23, 3 }
  0x38   : > { %s288_s30 = scalar_lea.vmem %s1142_s1, %s622_s24  ;;  %v413_v4 = vsub.s32 1, %v1004_v1  ;;  %v421_v5 = vsub.s32 0, %v1004_v1  ;;  %v329_v6 = vadd.s32 16, %v1004_v1  ;;  %v433_v10 = vsub.s32 2, %v1004_v1  ;;  %s291_s12 = scalar_lea.vmem %s1143_s2, %s1002_s23 }
  0x39   : > { %v342_v7 = vand.u32 7, %v328_v2  ;;  %vm1017_vm2 = vcmp.gt.s32.totalorder %v335_v3, 0  ;;  %vm1021_vm3 = vcmp.lt.s32.totalorder %v335_v3, 7  ;;  %v305_v13 = vld [vmem:[%s288_s30] sm:$0x7]  ;;  %v330_v14 = vadd.s32 24, %v1004_v1  ;;  %s295_s26 = scalar_lea.vmem %s1144_s3, %s623_s27  ;;  %s480_s23 = sadd.s32 %s627_s14, %s626_s13 }
  0x3a   : > { %v349_v15 = vand.u32 7, %v329_v6  ;;  %v414_v22 = vrot.slane %v305_v13, %v413_v4  ;;  %v422_v23 = vrot.slane %v305_v13, %v421_v5  ;;  %v320_v28 = vrot.slane %v634_v17, 1  ;;  %v624_v52 = vld [vmem:[%s291_s12] ss:$0 sm:$0xff]  ;;  %s283_s24 = scalar_lea.vmem [#allocation5], %s620_s9  ;;  %s628_s6 = sshll.u32 %s480_s23, 6 }
  0x3b   : > { %vm1027_vm4 = vcmp.gt.s32.totalorder %v342_v7, 0  ;;  %vm1031_vm5 = vcmp.lt.s32.totalorder %v342_v7, 7  ;;  %v321_v29 = vrot.slane %v637_v18, 1  ;;  %v317_v32 = vsel %vm314_vm0, %v308_v24, %v309_v25  ;;  %v307_v61 = vld [vmem:[%s295_s26] sm:$0xff]  ;;  %s483_s28 = sshll.u32 %s283_s24, 4  ;;  %s1088_s30 = scalar_lea.hbm %s1145_s4, %s628_s6  ;;  %s1083_s28 = int_to_ptr.vmem [resolvable:$true] %s483_s28 }
  0x3c   : > { %v415_v30 = vmul.f32 %v633_v16, %v414_v22  ;;  %v416_v31 = vmul.f32 %v634_v17, %v414_v22  ;;  %v318_v33 = vsel %vm314_vm0, %v311_v26, %v308_v24  ;;  %v434_v34 = vrot.slane %v305_v13, %v433_v10  ;;  %s466_s9 = scalar_lea.sflag [#allocation4], %s990_s29  ;;  %s762_s27 = scalar_lea.vmem %s1083_s28, 256 }
  0x3d   : > { %v310_v35 = vrot.slane %v637_v18, 7  ;;  %v325_v36 = vsel %vm323_vm1, %v320_v28, %v321_v29  ;;  %v326_v37 = vsel %vm323_vm1, %v319_v27, %v320_v28  ;;  %v391_v38 = vsel %vm1017_vm2, %v318_v33, 0.0  ;;  %p763_p8 = scmp.ne.s32.totalorder %s1083_s28, %s762_s27  ;;  %s768_s12 = scalar_lea.vmem %s767_s11, 512 }
  0x3e   : > { %v392_v39 = vsel %vm1027_vm4, %v317_v32, 0.0  ;;  %v407_v40 = vsel %vm1021_vm3, %v326_v37, 0.0  ;;  %v408_v41 = vsel %vm1031_vm5, %v325_v36, 0.0  ;;  %v423_v42 = vmul.f32 %v422_v23, %v391_v38  ;;  %p769_p5 = scmp.lt.s32.totalorder %s1083_s28, %s767_s11  ;;  %p770_p6 = scmp.lt.s32.totalorder %s768_s12, %s762_s27 }
  0x3f   : > { %v424_v43 = vmul.f32 %v422_v23, %v392_v39  ;;  %v435_v44 = vmul.f32 %v434_v34, %v407_v40  ;;  %v436_v45 = vmul.f32 %v434_v34, %v408_v41  ;;  %v315_v46 = vsel %vm314_vm0, %v310_v35, %v311_v26  ;;  %p764_p2 = pnand %p763_p8, %p957_p9 }
  0x40   : > { %v316_v47 = vsel %vm314_vm0, %v309_v25, %v310_v35  ;;  %v427_v48 = vadd.f32 %v423_v42, %v415_v30  ;;  %v322_v50 = vrot.slane %v638_v19, 1  ;;  %v356_v51 = vand.u32 7, %v330_v14  ;;  %p771_p7 = por %p770_p6, %p769_p5 }
  0x41   : > { %v428_v49 = vadd.f32 %v424_v43, %v416_v31  ;;  %vm1063_vm6 = vcmp.gt.s32.totalorder %v349_v15, 0  ;;  %vm1067_vm7 = vcmp.lt.s32.totalorder %v349_v15, 7  ;;  %v417_v55 = vmul.f32 %v637_v18, %v414_v22  ;;  %p765_p4 = pneg %p764_p2 }
  0x42   : > { %v418_v56 = vmul.f32 %v638_v19, %v414_v22  ;;  %v439_v57 = vadd.f32 %v435_v44, %v427_v48  ;;  %v324_v59 = vsel %vm323_vm1, %v321_v29, %v322_v50  ;;  %v327_v60 = vsel %vm323_vm1, %v322_v50, %v319_v27 }
  0x43   : > { %v440_v58 = vadd.f32 %v436_v45, %v428_v49  ;;  %vm382_vm8 = vcmp.gt.s32.totalorder %v356_v51, 0  ;;  %v393_v62 = vsel %vm1063_vm6, %v316_v47, 0.0  ;;  %vm398_vm9 = vcmp.lt.s32.totalorder %v356_v51, 7  ;;  %p772_p10 = pnand %p771_p7, %p765_p4 }
  0x44   : > { %v409_v63 = vsel %vm1067_vm7, %v324_v59, 0.0  ;;  %v449_v0 = vadd.f32 %v624_v52, %v439_v57  ;;  %v394_v3 = vsel %vm382_vm8, %v315_v46, 0.0  ;;  %v410_v4 = vsel %vm398_vm9, %v327_v60, 0.0 }
  0x45   : > { %v450_v2 = vadd.f32 %v624_v52, %v440_v58  ;;  %v425_v5 = vmul.f32 %v422_v23, %v393_v62  ;;  %v426_v6 = vmul.f32 %v422_v23, %v394_v3  ;;  %v437_v1 = vmul.f32 %v434_v34, %v409_v63 }
  0x46   : > { %v438_v7 = vmul.f32 %v434_v34, %v410_v4  ;;  %v453_v8 = vadd.f32 %v449_v0, %v307_v61 }
  0x47   : > { %v454_v9 = vadd.f32 %v450_v2, %v307_v61  ;;  %v429_v10 = vadd.f32 %v425_v5, %v417_v55  ;;  %v430_v11 = vadd.f32 %v426_v6, %v418_v56 }
  0x49   : > { %v642_v12 = vpack.c.bf16 %v454_v9, %v453_v8  ;;  %v441_v13 = vadd.f32 %v437_v1, %v429_v10  ;;  %v442_v14 = vadd.f32 %v438_v7, %v430_v11 }
  0x4b   : > { %643 = vst [vmem:[%s283_s24] sm:$0xff] %v642_v12   ;;  %v451_v15 = vadd.f32 %v624_v52, %v441_v13  ;;  %v452_v16 = vadd.f32 %v624_v52, %v442_v14 }
  0x4d   : > { %v455_v17 = vadd.f32 %v451_v15, %v307_v61  ;;  %v456_v18 = vadd.f32 %v452_v16, %v307_v61 }
  0x4f   : > { %v647_v19 = vpack.c.bf16 %v456_v18, %v455_v17 }
  0x51   : > { %650 = vst [vmem:[%s283_s24 + $0x8] sm:$0xff] %v647_v19  }
  0x52   : > { %775 = shalt.err (!%p772_p10)
}
  0x53   : > { %s776_s15 = scalar_lea.hbm %s1088_s30, 256  ;;  %s780_s13 = scalar_lea.hbm %s1145_s4, 1024 }
  0x54   : > { %p777_p11 = scmp.ne.s32.totalorder %s1088_s30, %s776_s15  ;;  %p781_p1 = scmp.lt.s32.totalorder %s1088_s30, %s1145_s4 }
  0x55   : > { %p782_p0 = scmp.lt.s32.totalorder %s780_s13, %s776_s15 }
  0x56   : > { %p778_p3 = pnand %p777_p11, %p957_p9 }
  0x57   : > { %p783_p8 = por %p782_p0, %p781_p1 }
  0x58   : > { %p779_p13 = pneg %p778_p3 }
  0x5a   : > { %p784_p2 = pnand %p783_p8, %p779_p13 }
  0x5c   : > { %787 = shalt.err (!%p784_p2)
}
  0x5d   : > { %s865_s24 = smov 64   ;;  %s866_s6 = smov 4  }
  0x5e   : > { %653 = dma.vmem_to_hbm [thread:$0]  (%p957_p9), %s1083_s28, 256, %s1088_s30, %s466_s9, %s865_s24, %s865_s24, %s866_s6  }
  0x5f PF: > { %s1169_s18 = sld [smem:[#allocation8_spill]]  ;;  %p664_p4 = scmp.ge.s32.totalorder %s858_s22, 2 }
  0x61   : > { %p660_p5 = pnand %p664_p4, %p963_p12 }
  0x63   : > { %p661_p6 = pneg %p660_p5 }
  0x65   : > { %s498_s19 = sand.u32 1, %s1169_s18  }
  0x66   : > { %s499_s27 = scalar_lea.sflag [#allocation4], %s498_s19 }
  0x67   : > { %825 = dma.done.wait (%p661_p6), %s499_s27, 256  }
  0x68   : > { %827 = vsyncadd (%p661_p6), %s499_s27, 4294967040  ;;  %s20_s22 = sadd.s32 1, %s858_s22   ;;  %s1170_s5 = sld [smem:[#allocation9_spill]] }
  0x69   : > { %p17_p7 = scmp.ge.s32.totalorder %s20_s22, 6   ;;  %s1171_s29 = sld [smem:[#allocation10_spill]] }
  0x6a   : > { %s1172_s15 = smov %s834_s16  ;;  %s1173_s16 = smov %s838_s17 }
  0x6b   : > { %s1174_s17 = smov %s970_s10  ;;  %s1175_s18 = smov %s850_s20 }
  0x6c   : > { %s1176_s19 = smov %s854_s21  ;;  %19 = sbr.rel (!%p17_p7) target bundleno = 7 (0x7), region = 90 }
  0x6e   : > { %s1177_s20 = smov %s1170_s5 }
  0x6f   : > { %s1178_s21 = smov %s1171_s29 }
  0x71   :  { %504 = vsyncpa [#allocation3], 1 }
  0x72   :  { %506 = vsyncpa [#allocation3 + $0x1], 1 }
  0x73   :  { %507 = vsyncpa [#allocation4], 1 }
  0x74   :  { %509 = vsyncpa [#allocation4 + $0x1], 1 }

</bundles_post_ra>
